<compile_context>
chip_gen: v6e
topology: v6e:2x2x1
jax: 0.10.0
libtpu: 0.0.40
codegen_flags: <defaults>
</compile_context>

<pallas_src>
import math
import functools

import jax
import jax.numpy as jnp
from jax.experimental import pallas as pl
from jax.experimental.pallas import tpu as pltpu


PI = math.pi
PHI_SCALE = PI / 2.0 - (-PI / 2.0)  # == pi, kept literal to match the module


def _sphere_kernel(x_ref, w1_ref, b1_ref, w2_ref, b2_ref, w3_ref, b3_ref,
                   scale_ref, offset_ref, out_ref):
    # x_ref: (in_dim, TB); weights: (out, in); biases/scale/offset: (out, 1)
    x = x_ref[...]
    h1 = jnp.tanh(
        jnp.dot(w1_ref[...], x, preferred_element_type=jnp.float32)
        + b1_ref[...])                                       # (H, TB)
    h2 = jnp.tanh(
        jnp.dot(w2_ref[...], h1, preferred_element_type=jnp.float32)
        + b2_ref[...])                                       # (H, TB)
    z = (jnp.dot(w3_ref[...], h2, preferred_element_type=jnp.float32)
         + b3_ref[...])                                      # (2*half, TB)
    # Per-feature affine (theta rows then phi rows), lane-dense store.
    out_ref[...] = jnp.tanh(z) * scale_ref[...] + offset_ref[...]


def _round_up(x, m):
    return (x + m - 1) // m * m


@functools.partial(jax.jit, static_argnames=("s_dim", "output_dim",
                                             "latent_dim", "block_batch"))
def sphere_surface_forward(i, params, *, s_dim, output_dim, latent_dim,
                           block_batch=512):
    """Forward pass matching SphereSurfaceModel.forward.

    i: (batch, s_dim*2 + latent_dim) float32
    returns (theta, phi) each of shape (batch, output_dim, s_dim)
    """
    w1, b1, w2, b2, w3, b3 = params
    in_dim = s_dim * 2 + latent_dim
    hidden = w1.shape[0]
    half = output_dim * s_dim
    out_dim_full = 2 * half

    x = i.reshape(-1, in_dim).astype(jnp.float32)
    batch = x.shape[0]

    # Batch tile: multiple of 128 (lane width); don't over-pad tiny batches.
    tb = min(block_batch, _round_up(batch, 128))
    b_pad = _round_up(batch, tb)
    grid = (b_pad // tb,)

    # Transpose to features-on-sublanes / batch-on-lanes; pad batch to tile.
    x_t = jnp.pad(x, ((0, b_pad - batch), (0, 0))).T          # (in_dim, b_pad)

    # Per-output-row affine constants (theta rows first, then phi rows).
    scale = jnp.concatenate(
        [jnp.full((half, 1), PI, jnp.float32),
         jnp.full((half, 1), PHI_SCALE / 2.0, jnp.float32)], axis=0)
    offset = jnp.concatenate(
        [jnp.zeros((half, 1), jnp.float32),
         jnp.full((half, 1), -PI / 2.0 + PHI_SCALE / 2.0, jnp.float32)],
        axis=0)

    # VMEM budget: resident params + a few buffered tiles + intermediates.
    param_bytes = 4 * sum(int(a.size) for a in (w1, b1, w2, b2, w3, b3))
    param_bytes += 4 * (scale.size + offset.size)
    tile_bytes = 4 * tb * (in_dim + out_dim_full)              # x + out tiles
    interm_bytes = 4 * tb * (2 * hidden + 2 * out_dim_full)    # h1,h2,z,scaled
    vmem_limit = int(min(
        max(2 * param_bytes + 3 * tile_bytes + 2 * interm_bytes + (8 << 20),
            16 << 20),
        32 << 20))

    const = lambda shape: pl.BlockSpec(shape, lambda b: (0, 0))

    out_t = pl.pallas_call(
        _sphere_kernel,
        out_shape=jax.ShapeDtypeStruct((out_dim_full, b_pad), jnp.float32),
        grid=grid,
        in_specs=[
            pl.BlockSpec((in_dim, tb), lambda b: (0, b)),      # x tile
            const(w1.shape), const(b1.shape),                  # resident params
            const(w2.shape), const(b2.shape),
            const(w3.shape), const(b3.shape),
            const(scale.shape), const(offset.shape),
        ],
        out_specs=pl.BlockSpec((out_dim_full, tb), lambda b: (0, b)),
        compiler_params=pltpu.CompilerParams(
            dimension_semantics=("parallel",),
            vmem_limit_bytes=vmem_limit),
    )(x_t, w1, b1, w2, b2, w3, b3, scale, offset)

    # Boundary glue only: transpose back, drop padding, reshape, split.
    out = out_t.T[:batch].reshape(batch, 2 * output_dim, s_dim)
    theta = out[:, :output_dim, :]
    phi = out[:, output_dim:, :]
    return theta, phi


def init_params(key, s_dim, output_dim, latent_dim, hidden_units=64):
    """Deterministic parameter init (xavier_uniform weights, PyTorch-default
    uniform biases).  Weights stored in PyTorch layout (out_features,
    in_features); biases stored (out_features, 1)."""
    in_dim = s_dim * 2 + latent_dim
    out_dim_full = s_dim * 2 * output_dim
    dims = [(in_dim, hidden_units),
            (hidden_units, hidden_units),
            (hidden_units, out_dim_full)]
    params = []
    keys = jax.random.split(key, 2 * len(dims))
    for li, (fan_in, fan_out) in enumerate(dims):
        wkey, bkey = keys[2 * li], keys[2 * li + 1]
        limit = math.sqrt(6.0 / (fan_in + fan_out))            # xavier_uniform
        w = jax.random.uniform(wkey, (fan_out, fan_in), jnp.float32,
                               minval=-limit, maxval=limit)
        blim = 1.0 / math.sqrt(fan_in)                         # default bias init
        b = jax.random.uniform(bkey, (fan_out, 1), jnp.float32,
                               minval=-blim, maxval=blim)
        params += [w, b]
    return tuple(params)


def reference_forward(i, params, *, s_dim, output_dim, latent_dim):
    """Pure-JAX reference (batch, features layout) for correctness checking."""
    w1, b1, w2, b2, w3, b3 = params
    x = i.reshape(-1, s_dim * 2 + latent_dim)
    h1 = jnp.tanh(x @ w1.T + b1[:, 0])
    h2 = jnp.tanh(h1 @ w2.T + b2[:, 0])
    out = (h2 @ w3.T + b3[:, 0]).reshape(-1, 2 * output_dim, s_dim)
    theta = jnp.tanh(out[:, :output_dim, :]) * PI
    phi = (jnp.tanh(out[:, output_dim:, :]) * PHI_SCALE / 2.0
           - PI / 2.0 + PHI_SCALE / 2.0)
    return theta, phi


if __name__ == "__main__":
    s_dim = 4
    output_dim = 3
    latent_dim = 8
    hidden_units = 32
    batch = 8

    key = jax.random.PRNGKey(0)
    pkey, xkey = jax.random.split(key)
    params = init_params(pkey, s_dim, output_dim, latent_dim, hidden_units)

    x = jax.random.normal(xkey, (batch, s_dim * 2 + latent_dim), jnp.float32)

    theta, phi = sphere_surface_forward(
        x, params, s_dim=s_dim, output_dim=output_dim, latent_dim=latent_dim)
    jax.block_until_ready((theta, phi))

    theta_ref, phi_ref = reference_forward(
        x, params, s_dim=s_dim, output_dim=output_dim, latent_dim=latent_dim)

    assert theta.shape == (batch, output_dim, s_dim)
    assert phi.shape == (batch, output_dim, s_dim)
    assert jnp.allclose(theta, theta_ref, atol=1e-5, rtol=1e-5)
    assert jnp.allclose(phi, phi_ref, atol=1e-5, rtol=1e-5)

    # Exercise a multi-tile grid (batch > one 128-lane tile) as well.
    xb = jax.random.normal(jax.random.PRNGKey(1),
                           (300, s_dim * 2 + latent_dim), jnp.float32)
    tb_theta, tb_phi = sphere_surface_forward(
        xb, params, s_dim=s_dim, output_dim=output_dim, latent_dim=latent_dim,
        block_batch=128)
    jax.block_until_ready((tb_theta, tb_phi))
    rb_theta, rb_phi = reference_forward(
        xb, params, s_dim=s_dim, output_dim=output_dim, latent_dim=latent_dim)
    assert jnp.allclose(tb_theta, rb_theta, atol=1e-5, rtol=1e-5)
    assert jnp.allclose(tb_phi, rb_phi, atol=1e-5, rtol=1e-5)

    print("KERNEL_OK")
</pallas_src>

<mosaic_0001>
module attributes {stable_mosaic.version = 11 : i64} {
  func.func @_sphere_kernel(%arg0: i32, %arg1: memref<16x128xf32, #tpu.memory_space<vmem>>, %arg2: memref<32x16xf32, #tpu.memory_space<vmem>>, %arg3: memref<32x1xf32, #tpu.memory_space<vmem>>, %arg4: memref<32x32xf32, #tpu.memory_space<vmem>>, %arg5: memref<32x1xf32, #tpu.memory_space<vmem>>, %arg6: memref<24x32xf32, #tpu.memory_space<vmem>>, %arg7: memref<24x1xf32, #tpu.memory_space<vmem>>, %arg8: memref<24x1xf32, #tpu.memory_space<vmem>>, %arg9: memref<24x1xf32, #tpu.memory_space<vmem>>, %arg10: memref<24x128xf32, #tpu.memory_space<vmem>>) attributes {dimension_semantics = [#tpu.dimension_semantics<parallel>], iteration_bounds = array<i64: 1>, scalar_prefetch = 0 : i64, scratch_operands = 0 : i64, tpu.core_type = #tpu.core_type<tc>, window_params = [{transform_indices = @transform_0, window_bounds = array<i64: 16, 128>}, {pipeline_mode = #tpu.pipeline_mode<synchronous>, transform_indices = @transform_1, window_bounds = array<i64: 32, 16>}, {pipeline_mode = #tpu.pipeline_mode<synchronous>, transform_indices = @transform_2, window_bounds = array<i64: 32, 1>}, {pipeline_mode = #tpu.pipeline_mode<synchronous>, transform_indices = @transform_3, window_bounds = array<i64: 32, 32>}, {pipeline_mode = #tpu.pipeline_mode<synchronous>, transform_indices = @transform_4, window_bounds = array<i64: 32, 1>}, {pipeline_mode = #tpu.pipeline_mode<synchronous>, transform_indices = @transform_5, window_bounds = array<i64: 24, 32>}, {pipeline_mode = #tpu.pipeline_mode<synchronous>, transform_indices = @transform_6, window_bounds = array<i64: 24, 1>}, {pipeline_mode = #tpu.pipeline_mode<synchronous>, transform_indices = @transform_7, window_bounds = array<i64: 24, 1>}, {pipeline_mode = #tpu.pipeline_mode<synchronous>, transform_indices = @transform_8, window_bounds = array<i64: 24, 1>}, {transform_indices = @transform_9, window_bounds = array<i64: 24, 128>}]} {
    %c0 = arith.constant 0 : index
    %c0_0 = arith.constant 0 : index
    %0 = vector.load %arg1[%c0, %c0_0] : memref<16x128xf32, #tpu.memory_space<vmem>>, vector<16x128xf32>
    %c0_1 = arith.constant 0 : index
    %c0_2 = arith.constant 0 : index
    %1 = vector.load %arg2[%c0_1, %c0_2] : memref<32x16xf32, #tpu.memory_space<vmem>>, vector<32x16xf32>
    %cst = arith.constant dense<0.000000e+00> : vector<32x128xf32>
    %2 = tpu.matmul %1, %0, %cst {dimension_numbers = #tpu.dot_dimension_numbers<[1], [0], [0], [1], [0, 0, 1, 1], [], []>} : vector<32x16xf32>, vector<16x128xf32>, vector<32x128xf32> -> vector<32x128xf32>
    %c0_3 = arith.constant 0 : index
    %c0_4 = arith.constant 0 : index
    %3 = vector.load %arg3[%c0_3, %c0_4] : memref<32x1xf32, #tpu.memory_space<vmem>>, vector<32x1xf32>
    %4 = vector.broadcast %3 : vector<32x1xf32> to vector<32x128xf32>
    %5 = arith.addf %2, %4 : vector<32x128xf32>
    %6 = math.tanh %5 : vector<32x128xf32>
    %c0_5 = arith.constant 0 : index
    %c0_6 = arith.constant 0 : index
    %7 = vector.load %arg4[%c0_5, %c0_6] : memref<32x32xf32, #tpu.memory_space<vmem>>, vector<32x32xf32>
    %cst_7 = arith.constant dense<0.000000e+00> : vector<32x128xf32>
    %8 = tpu.matmul %7, %6, %cst_7 {dimension_numbers = #tpu.dot_dimension_numbers<[1], [0], [0], [1], [0, 0, 1, 1], [], []>} : vector<32x32xf32>, vector<32x128xf32>, vector<32x128xf32> -> vector<32x128xf32>
    %c0_8 = arith.constant 0 : index
    %c0_9 = arith.constant 0 : index
    %9 = vector.load %arg5[%c0_8, %c0_9] : memref<32x1xf32, #tpu.memory_space<vmem>>, vector<32x1xf32>
    %10 = vector.broadcast %9 : vector<32x1xf32> to vector<32x128xf32>
    %11 = arith.addf %8, %10 : vector<32x128xf32>
    %12 = math.tanh %11 : vector<32x128xf32>
    %c0_10 = arith.constant 0 : index
    %c0_11 = arith.constant 0 : index
    %13 = vector.load %arg6[%c0_10, %c0_11] : memref<24x32xf32, #tpu.memory_space<vmem>>, vector<24x32xf32>
    %cst_12 = arith.constant dense<0.000000e+00> : vector<24x128xf32>
    %14 = tpu.matmul %13, %12, %cst_12 {dimension_numbers = #tpu.dot_dimension_numbers<[1], [0], [0], [1], [0, 0, 1, 1], [], []>} : vector<24x32xf32>, vector<32x128xf32>, vector<24x128xf32> -> vector<24x128xf32>
    %c0_13 = arith.constant 0 : index
    %c0_14 = arith.constant 0 : index
    %15 = vector.load %arg7[%c0_13, %c0_14] : memref<24x1xf32, #tpu.memory_space<vmem>>, vector<24x1xf32>
    %16 = vector.broadcast %15 : vector<24x1xf32> to vector<24x128xf32>
    %17 = arith.addf %14, %16 : vector<24x128xf32>
    %18 = math.tanh %17 : vector<24x128xf32>
    %c0_15 = arith.constant 0 : index
    %c0_16 = arith.constant 0 : index
    %19 = vector.load %arg8[%c0_15, %c0_16] : memref<24x1xf32, #tpu.memory_space<vmem>>, vector<24x1xf32>
    %20 = vector.broadcast %19 : vector<24x1xf32> to vector<24x128xf32>
    %21 = arith.mulf %18, %20 : vector<24x128xf32>
    %c0_17 = arith.constant 0 : index
    %c0_18 = arith.constant 0 : index
    %22 = vector.load %arg9[%c0_17, %c0_18] : memref<24x1xf32, #tpu.memory_space<vmem>>, vector<24x1xf32>
    %23 = vector.broadcast %22 : vector<24x1xf32> to vector<24x128xf32>
    %24 = arith.addf %21, %23 : vector<24x128xf32>
    %c0_19 = arith.constant 0 : index
    %c0_20 = arith.constant 0 : index
    %25 = vector.load %arg10[%c0_19, %c0_20] : memref<24x128xf32, #tpu.memory_space<vmem>>, vector<24x128xf32>
    tpu.vector_store %arg10[%c0_19, %c0_20], %24 {strides = array<i32>} : memref<24x128xf32, #tpu.memory_space<vmem>>, vector<24x128xf32>,
    return
  }
  func.func @transform_0(%arg0: i32) -> (i32, i32) {
    %c0_i32 = arith.constant 0 : i32
    %c0_i32_0 = arith.constant 0 : i32
    return %c0_i32, %arg0 : i32, i32
  }
  func.func @transform_1(%arg0: i32) -> (i32, i32) {
    %c0_i32 = arith.constant 0 : i32
    %c0_i32_0 = arith.constant 0 : i32
    %c0_i32_1 = arith.constant 0 : i32
    return %c0_i32, %c0_i32_0 : i32, i32
  }
  func.func @transform_2(%arg0: i32) -> (i32, i32) {
    %c0_i32 = arith.constant 0 : i32
    %c0_i32_0 = arith.constant 0 : i32
    %c0_i32_1 = arith.constant 0 : i32
    return %c0_i32, %c0_i32_0 : i32, i32
  }
  func.func @transform_3(%arg0: i32) -> (i32, i32) {
    %c0_i32 = arith.constant 0 : i32
    %c0_i32_0 = arith.constant 0 : i32
    %c0_i32_1 = arith.constant 0 : i32
    return %c0_i32, %c0_i32_0 : i32, i32
  }
  func.func @transform_4(%arg0: i32) -> (i32, i32) {
    %c0_i32 = arith.constant 0 : i32
    %c0_i32_0 = arith.constant 0 : i32
    %c0_i32_1 = arith.constant 0 : i32
    return %c0_i32, %c0_i32_0 : i32, i32
  }
  func.func @transform_5(%arg0: i32) -> (i32, i32) {
    %c0_i32 = arith.constant 0 : i32
    %c0_i32_0 = arith.constant 0 : i32
    %c0_i32_1 = arith.constant 0 : i32
    return %c0_i32, %c0_i32_0 : i32, i32
  }
  func.func @transform_6(%arg0: i32) -> (i32, i32) {
    %c0_i32 = arith.constant 0 : i32
    %c0_i32_0 = arith.constant 0 : i32
    %c0_i32_1 = arith.constant 0 : i32
    return %c0_i32, %c0_i32_0 : i32, i32
  }
  func.func @transform_7(%arg0: i32) -> (i32, i32) {
    %c0_i32 = arith.constant 0 : i32
    %c0_i32_0 = arith.constant 0 : i32
    %c0_i32_1 = arith.constant 0 : i32
    return %c0_i32, %c0_i32_0 : i32, i32
  }
  func.func @transform_8(%arg0: i32) -> (i32, i32) {
    %c0_i32 = arith.constant 0 : i32
    %c0_i32_0 = arith.constant 0 : i32
    %c0_i32_1 = arith.constant 0 : i32
    return %c0_i32, %c0_i32_0 : i32, i32
  }
  func.func @transform_9(%arg0: i32) -> (i32, i32) {
    %c0_i32 = arith.constant 0 : i32
    %c0_i32_0 = arith.constant 0 : i32
    return %c0_i32, %arg0 : i32, i32
  }
}

</mosaic_0001>

<bundles_post_ra>
// kernel: sphere_surface_forward.1
= control target key start
LH: loop header
LB: loop body
LE: loop exit
PB: predicated region body
PF: predicated region fallthrough
CT: control target
= control target key end

     0   :  { %vm62_vm0 = vcmask 130048   ;;  %v556_v3 = vmov 0   ;;  %vm192_vm1 = vcmask 261120   ;;  %v557_v44 = vmov 0.0   ;;  %s722_s0 = inlined_call_operand.vmem [shape: f32[16,128], index: 0, kind: input, shape index: {}]   ;;  %s723_s1 = inlined_call_operand.vmem [shape: f32[32,16], index: 1, kind: input, shape index: {}]   ;;  %s724_s2 = inlined_call_operand.vmem [shape: f32[32,1], index: 2, kind: input, shape index: {}]   ;;  %s725_s4 = inlined_call_operand.vmem [shape: f32[32,1], index: 4, kind: input, shape index: {}]   ;;  %s726_s6 = inlined_call_operand.vmem [shape: f32[24,1], index: 6, kind: input, shape index: {}]   ;;  %s727_s7 = inlined_call_operand.vmem [shape: f32[24,1], index: 7, kind: input, shape index: {}]   ;;  %s728_s8 = inlined_call_operand.vmem [shape: f32[24,1], index: 8, kind: input, shape index: {}]   ;;  %s729_s3 = inlined_call_operand.vmem [shape: f32[32,32], index: 3, kind: input, shape index: {}]   ;;  %s730_s5 = inlined_call_operand.vmem [shape: f32[24,32], index: 5, kind: input, shape index: {}]   ;;  %s731_s9 = inlined_call_operand.vmem [shape: f32[24,128], index: 9, kind: output, shape index: {}]  }
   0x1   :  { %v33_v0 = vld [vmem:[%s722_s0 + $0x8] sm:$0xff]  ;;  %v32_v1 = vld [vmem:[%s722_s0] sm:$0xff]  ;;  %532 = vset.pattern.permute.xlu0 %v556_v3  ;;  %533 = vset.pattern.permute.xlu1 %v556_v3  ;;  %v41_v5 = vld [vmem:[%s724_s2 + $0x18] sm:$0xff]  ;;  %vm558_vm2 = vmmov 0  }
   0x2   :  { %v34_v2 = vld [vmem:[%s723_s1] sm:$0xff]  ;;  %488 = vmatprep.subr.mxu1 %v33_v0  ;;  %v35_v4 = vld [vmem:[%s723_s1 + $0x8] sm:$0xff]  ;;  %v36_v6 = vld [vmem:[%s723_s1 + $0x10] sm:$0xff]  ;;  %59 = vperm.xlu0 %532, %v41_v5  }
   0x3   :  { %492 = vmatprep.mubr.msk.f32.mxu1 %vm62_vm0, %v34_v2  ;;  %489 = vmatpush3.msra.mxu1 %v33_v0  ;;  %v39_v7 = vld [vmem:[%s724_s2 + $0x8] sm:$0xff]  ;;  %v40_v8 = vld [vmem:[%s724_s2 + $0x10] sm:$0xff]  ;;  %v38_v9 = vld [vmem:[%s724_s2] sm:$0xff] }
   0x4   :  { %490 = vmatprep.subr.mxu1 %v32_v1  ;;  %49 = vperm.xlu1 %533, %v39_v7   ;;  %v37_v10 = vld [vmem:[%s723_s1 + $0x18] sm:$0xff]  ;;  %v170_v12 = vld [vmem:[%s725_s4 + $0x10] sm:$0xff]  ;;  %v169_v13 = vld [vmem:[%s725_s4 + $0x8] sm:$0xff] }
   0x5   :  { %491 = vmatpush3.msra.mxu1 %v32_v1  ;;  %v171_v11 = vld [vmem:[%s725_s4 + $0x18] sm:$0xff]  ;;  %v168_v14 = vld [vmem:[%s725_s4] sm:$0xff]  ;;  %v298_v16 = vld [vmem:[%s726_s6 + $0x8] sm:$0xff]  ;;  %512 = vmatprep.subr.mxu0 %v557_v44 }
   0x6   :  { %493 = vmatmul.mubr.msk.f32.vlgmr.msra.gmra.mxu1 %vm62_vm0, %v35_v4  ;;  %54 = vperm.xlu0 %532, %v40_v8   ;;  %v297_v15 = vld [vmem:[%s726_s6] sm:$0xff]  ;;  %v299_v17 = vld [vmem:[%s726_s6 + $0x10] sm:$0xff]  ;;  %v408_v19 = vld [vmem:[%s727_s7 + $0x8] sm:$0xff] }
   0x7   :  { %495 = vmatprep.mubr.msk.f32.mxu1 %vm62_vm0, %v36_v6  ;;  %v407_v18 = vld [vmem:[%s727_s7] sm:$0xff]  ;;  %v409_v20 = vld [vmem:[%s727_s7 + $0x10] sm:$0xff]  ;;  %v429_v22 = vld [vmem:[%s728_s8 + $0x8] sm:$0xff]  ;;  %520 = vmatprep.mubr.msk.f32.mxu0 %vm558_vm2, %v557_v44 }
   0x8   :  { %44 = vperm.xlu1 %533, %v38_v9   ;;  %v428_v21 = vld [vmem:[%s728_s8] sm:$0xff]  ;;  %v430_v23 = vld [vmem:[%s728_s8 + $0x10] sm:$0xff]  ;;  %v165_v41 = vld [vmem:[%s729_s3 + $0x8] sm:$0xff] }
   0x9   :  { %v164_v24 = vld [vmem:[%s729_s3] sm:$0xff]  ;;  %v166_v42 = vld [vmem:[%s729_s3 + $0x10] sm:$0xff]  ;;  %v167_v43 = vld [vmem:[%s729_s3 + $0x18] sm:$0xff] }
   0xa   :  { %496 = vmatmul.mubr.msk.f32.gmra.mxu1 %vm62_vm0, %v37_v10  ;;  %189 = vperm.xlu0 %532, %v171_v11   ;;  %v294_v60 = vld [vmem:[%s730_s5] sm:$0xff]  ;;  %v295_v62 = vld [vmem:[%s730_s5 + $0x8] sm:$0xff]  ;;  %v296_v63 = vld [vmem:[%s730_s5 + $0x10] sm:$0xff] }
   0xb   :  { %506 = vmatprep.mubr.msk.f32.mxu1 %vm192_vm1, %v164_v24 }
   0xc   :  { %184 = vperm.xlu1 %533, %v170_v12  }
   0xe   :  { %179 = vperm.xlu0 %532, %v169_v13  }
  0x10   :  { %174 = vperm.xlu1 %533, %v168_v14  }
  0x12   :  { %302 = vperm.xlu0 %532, %v297_v15  }
  0x14   :  { %307 = vperm.xlu1 %533, %v298_v16  }
  0x16   :  { %312 = vperm.xlu0 %532, %v299_v17  }
  0x18   :  { %412 = vperm.xlu1 %533, %v407_v18  }
  0x1a   :  { %417 = vperm.xlu0 %532, %v408_v19  }
  0x1c   :  { %422 = vperm.xlu1 %533, %v409_v20  }
  0x1e   :  { %433 = vperm.xlu0 %532, %v428_v21  }
  0x20   :  { %438 = vperm.xlu1 %533, %v429_v22  }
  0x22   :  { %443 = vperm.xlu0 %532, %v430_v23  }
  0x7d   :  { %v60_v25 = vpop.permute.xlu0 %59 }
  0x7f   :  { %v50_v27 = vpop.permute.xlu1 %49 }
  0x81   :  { %v55_v31 = vpop.permute.xlu0 %54 }
  0x83   :  { %v45_v35 = vpop.permute.xlu1 %44 }
  0x85   :  { %v190_v45 = vpop.permute.xlu0 %189 }
  0x87   :  { %v185_v47 = vpop.permute.xlu1 %184 }
  0x89   :  { %v180_v51 = vpop.permute.xlu0 %179 }
  0x8b   :  { %v175_v55 = vpop.permute.xlu1 %174 }
  0x8d   :  { %v303_v0 = vpop.permute.xlu0 %302 }
  0x8f   :  { %v308_v4 = vpop.permute.xlu1 %307 }
  0x91   :  { %v313_v7 = vpop.permute.xlu0 %312 }
  0x93   :  { %v413_v11 = vpop.permute.xlu1 %412 }
  0x95   :  { %v418_v13 = vpop.permute.xlu0 %417 }
  0x97   :  { %v423_v15 = vpop.permute.xlu1 %422 }
  0x99   :  { %v434_v17 = vpop.permute.xlu0 %433 }
  0x9b   :  { %v439_v21 = vpop.permute.xlu1 %438 }
  0xc6   :  { %v494_v26 = vpop.f32.mrf.mxu1 }
  0xc7   :  { %v147_v33 = vadd.f32 %v494_v26, %v50_v27 }
  0xc8   :  { %v141_v28 = vpop.f32.mrf.mxu1 }
  0xc9   :  { %v142_v36 = vadd.f32 %v141_v28, %v45_v35 }
  0xca   :  { %v497_v29 = vpop.f32.mrf.mxu1 }
  0xcb   :  { %v157_v30 = vadd.f32 %v497_v29, %v60_v25  ;;  %v444_v25 = vpop.permute.xlu0 %443 }
  0xcc   :  { %v151_v32 = vpop.f32.mrf.mxu1 }
  0xcd   :  { %534 = vtanh.f32 %v157_v30  ;;  %v152_v34 = vadd.f32 %v151_v32, %v55_v31 }
  0xcf   :  { %536 = vtanh.f32 %v152_v34 }
  0xd0   :  { %538 = vtanh.f32 %v147_v33 }
  0xd1   :  { %540 = vtanh.f32 %v142_v36 }
  0xda   :  { %v535_v37 = vpop.eup %534 }
  0xdb   :  { %498 = vmatprep.subr.mxu1 %v535_v37 }
  0xdc   :  { %v537_v38 = vpop.eup %536  ;;  %499 = vmatpush3.msra.mxu1 %v535_v37 }
  0xdd   :  { %500 = vmatprep.subr.mxu1 %v537_v38  ;;  %v539_v39 = vpop.eup %538 }
  0xde   :  { %501 = vmatpush3.msra.mxu1 %v537_v38  ;;  %v541_v40 = vpop.eup %540 }
  0xdf   :  { %502 = vmatprep.subr.mxu1 %v539_v39 }
  0xe0   :  { %503 = vmatpush3.msra.mxu1 %v539_v39 }
  0xe1   :  { %504 = vmatprep.subr.mxu1 %v541_v40 }
  0xe2   :  { %505 = vmatpush3.msra.mxu1 %v541_v40 }
  0xe3   :  { %507 = vmatmul.mubr.msk.f32.vlgmr.msra.gmra.mxu1 %vm192_vm1, %v165_v41 }
  0xe4   :  { %509 = vmatprep.mubr.msk.f32.mxu1 %vm192_vm1, %v166_v42 }
  0xe7   :  { %510 = vmatmul.mubr.msk.f32.gmra.mxu1 %vm192_vm1, %v167_v43 }
 0x1a3   :  { %v508_v46 = vpop.f32.mrf.mxu1 }
 0x1a4   :  { %v277_v53 = vadd.f32 %v508_v46, %v180_v51 }
 0x1a5   :  { %v271_v48 = vpop.f32.mrf.mxu1 }
 0x1a6   :  { %v272_v56 = vadd.f32 %v271_v48, %v175_v55 }
 0x1a7   :  { %v511_v49 = vpop.f32.mrf.mxu1 }
 0x1a8   :  { %v287_v50 = vadd.f32 %v511_v49, %v190_v45 }
 0x1a9   :  { %v281_v52 = vpop.f32.mrf.mxu1 }
 0x1aa   :  { %542 = vtanh.f32 %v287_v50  ;;  %v282_v54 = vadd.f32 %v281_v52, %v185_v47 }
 0x1ac   :  { %544 = vtanh.f32 %v282_v54 }
 0x1ad   :  { %546 = vtanh.f32 %v277_v53 }
 0x1ae   :  { %548 = vtanh.f32 %v272_v56 }
 0x1b7   :  { %v543_v57 = vpop.eup %542 }
 0x1b8   :  { %513 = vmatpush3.msra.mxu0 %v543_v57 }
 0x1b9   :  { %v545_v58 = vpop.eup %544  ;;  %514 = vmatprep.subr.mxu0 %v557_v44 }
 0x1ba   :  { %515 = vmatpush3.msra.mxu0 %v545_v58  ;;  %v547_v59 = vpop.eup %546 }
 0x1bb   :  { %516 = vmatprep.subr.mxu0 %v557_v44  ;;  %v549_v61 = vpop.eup %548 }
 0x1bc   :  { %517 = vmatpush3.msra.mxu0 %v547_v59 }
 0x1bd   :  { %518 = vmatprep.subr.mxu0 %v557_v44 }
 0x1be   :  { %519 = vmatpush3.msra.mxu0 %v549_v61 }
 0x1bf   :  { %521 = vmatmul.mubr.msk.f32.vlgmr.msra.gmra.mxu0 %vm192_vm1, %v294_v60 }
 0x1c0   :  { %523 = vmatprep.mubr.msk.f32.mxu0 %vm558_vm2, %v557_v44 }
 0x1c3   :  { %524 = vmatmul.mubr.msk.f32.gmra.mxu0 %vm192_vm1, %v295_v62 }
 0x1c4   :  { %526 = vmatprep.mubr.msk.f32.mxu0 %vm558_vm2, %v557_v44 }
 0x1c7   :  { %527 = vmatmul.mubr.msk.f32.gmra.mxu0 %vm192_vm1, %v296_v63 }
 0x27f   :  { %v390_v1 = vpop.f32.mrf.mxu0 }
 0x280   :  { %v391_v2 = vadd.f32 %v390_v1, %v303_v0 }
 0x281   :  { %v522_v3 = vpop.f32.mrf.mxu0 }
 0x282   :  { %550 = vtanh.f32 %v391_v2 }
 0x283   :  { %v395_v5 = vpop.f32.mrf.mxu0 }
 0x284   :  { %v396_v6 = vadd.f32 %v395_v5, %v308_v4 }
 0x285   :  { %v525_v8 = vpop.f32.mrf.mxu0 }
 0x286   :  { %552 = vtanh.f32 %v396_v6 }
 0x287   :  { %v400_v9 = vpop.f32.mrf.mxu0 }
 0x288   :  { %v401_v10 = vadd.f32 %v400_v9, %v313_v7 }
 0x289   :  { %v528_v12 = vpop.f32.mrf.mxu0 }
 0x28a   :  { %554 = vtanh.f32 %v401_v10 }
 0x28f   :  { %v551_v14 = vpop.eup %550 }
 0x290   :  { %v425_v16 = vmul.f32 %v551_v14, %v413_v11 }
 0x292   :  { %v446_v18 = vadd.f32 %v434_v17, %v425_v16 }
 0x293   :  { %v553_v19 = vpop.eup %552 }
 0x294   :  { %449 = vst [vmem:[%s731_s9] sm:$0xff] %v446_v18  ;;  %v426_v20 = vmul.f32 %v553_v19, %v418_v13 }
 0x296   :  { %v447_v22 = vadd.f32 %v439_v21, %v426_v20 }
 0x297   :  { %v555_v23 = vpop.eup %554 }
 0x298   :  { %450 = vst [vmem:[%s731_s9 + $0x8] sm:$0xff] %v447_v22  ;;  %v427_v24 = vmul.f32 %v555_v23, %v423_v15 }
 0x29a   :  { %v448_v26 = vadd.f32 %v444_v25, %v427_v24 }
 0x29c   :  { %451 = vst [vmem:[%s731_s9 + $0x10] sm:$0xff] %v448_v26 }

</bundles_post_ra>
